<compile_context>
chip_gen: v7x
topology: tpu7x:2x2x1
jax: 0.10.0
libtpu: 0.0.40
codegen_flags: <defaults>
</compile_context>

<pallas_src>
import jax
import jax.numpy as jnp
from jax import lax
from jax.experimental import pallas as pl
from jax.experimental.pallas import tpu as pltpu


def _round_up(n, m):
    return ((n + m - 1) // m) * m


def chessnet_kernel(x_ref, w_ref, b_ref, out_ref):
    """Fused ChessNet forward on one batch tile.

    w_ref: packed (320, 128) weight slab
        rows   0.. 63 : w1  (64 -> 128)
        rows  64..191 : w2  (128 -> 64), zero-padded to 128 output lanes
        rows 192..319 : fused heads (64 -> [policy 64 | value 1 | zero pad]),
                        zero-padded to 128 input rows
    b_ref: (8, 128) bias slab; row 0 = b1, row 1 = b2 (padded), row 2 = heads.
    out_ref: (TB, 128) lane-dense output; lanes 0..63 = policy, lane 64 = value.
    """
    x = x_ref[...]                                               # (TB, 64)

    # Static, tile-aligned views into the packed slabs (no data movement).
    w1 = w_ref[0:64, :]                                          # (64, 128)
    w2 = w_ref[64:192, :]                                        # (128, 128)
    wh = w_ref[192:320, :]                                       # (128, 128)
    b1 = b_ref[0:1, :]                                           # (1, 128)
    b2 = b_ref[1:2, :]
    bh = b_ref[2:3, :]

    # fc1 + relu
    h1 = jnp.maximum(
        jnp.dot(x, w1, preferred_element_type=jnp.float32) + b1, 0.0)
    # fc2 + relu (padded lanes 64..127 stay exactly 0: zero weights + zero bias)
    h2 = jnp.maximum(
        jnp.dot(h1, w2, preferred_element_type=jnp.float32) + b2, 0.0)
    # fused policy/value heads: one MXU pass, one lane-dense store.
    raw = jnp.dot(h2, wh, preferred_element_type=jnp.float32) + bh   # (TB, 128)

    # tanh only on the value lane (column 64); policy lanes pass through.
    lane = lax.broadcasted_iota(jnp.int32, raw.shape, dimension=1)
    out_ref[...] = jnp.where(lane == 64, jnp.tanh(raw), raw)


def pack_params(p):
    """Pack natural (in, out)-layout params into the MXU/lane-friendly slabs."""
    w1, b1 = p["w1"], p["b1"]   # (64,128), (1,128)
    w2, b2 = p["w2"], p["b2"]   # (128,64), (1,64)
    wp, bp = p["wp"], p["bp"]   # (64,64),  (1,64)
    wv, bv = p["wv"], p["bv"]   # (64,1),   (1,1)

    f32 = jnp.float32
    w2p = jnp.zeros((128, 128), f32).at[:, :64].set(w2.astype(f32))
    whp = (jnp.zeros((128, 128), f32)
           .at[:64, :64].set(wp.astype(f32))
           .at[:64, 64:65].set(wv.astype(f32)))
    wslab = jnp.concatenate([w1.astype(f32), w2p, whp], axis=0)   # (320, 128)

    bslab = jnp.zeros((8, 128), f32)
    bslab = bslab.at[0:1, :].set(b1.astype(f32))
    bslab = bslab.at[1:2, :64].set(b2.astype(f32))
    bslab = bslab.at[2:3, :64].set(bp.astype(f32))
    bslab = bslab.at[2:3, 64:65].set(bv.astype(f32))
    return wslab, bslab


def chessnet_forward(x, params, *, tile_b=512):
    """x: (B, 64) float32.  params: dict of weights/biases (see init_params).

    Returns (policy (B, 64), value (B, 1)).
    """
    B, F = x.shape
    assert F == 64

    # Large batch tiles amortize per-step pipeline overhead; clamp the tile to
    # the (8-rounded) batch so small batches don't waste compute, and pad the
    # batch so the grid divides evenly.  At large B the grid keeps >=2 steps so
    # the "parallel" axis shards across both TensorCores on v7x.
    tb = min(tile_b, _round_up(B, 8))
    Bp = _round_up(B, tb)
    if Bp != B:
        x = jnp.pad(x, ((0, Bp - B), (0, 0)))
    grid = (Bp // tb,)

    wslab, bslab = pack_params(params)

    out = pl.pallas_call(
        chessnet_kernel,
        out_shape=jax.ShapeDtypeStruct((Bp, 128), jnp.float32),
        grid_spec=pltpu.PrefetchScalarGridSpec(
            num_scalar_prefetch=0,
            grid=grid,
            in_specs=[
                pl.BlockSpec((tb, 64), lambda i: (i, 0)),     # x (batch-tiled)
                pl.BlockSpec((320, 128), lambda i: (0, 0)),   # packed weights
                pl.BlockSpec((8, 128), lambda i: (0, 0)),     # packed biases
            ],
            out_specs=pl.BlockSpec((tb, 128), lambda i: (i, 0)),
        ),
        compiler_params=pltpu.CompilerParams(
            dimension_semantics=("parallel",)),
    )(x, wslab, bslab)

    policy = out[:B, :64]
    value = out[:B, 64:65]
    return policy, value


def init_params(key):
    """Deterministic init matching nn.Linear default U(-1/sqrt(fan_in), +1/sqrt(fan_in)).
    Weights stored as (in_features, out_features); biases as (1, out_features)."""
    def linear(key, fan_in, fan_out):
        kw, kb = jax.random.split(key)
        bound = 1.0 / jnp.sqrt(fan_in)
        w = jax.random.uniform(kw, (fan_in, fan_out), jnp.float32, -bound, bound)
        b = jax.random.uniform(kb, (1, fan_out), jnp.float32, -bound, bound)
        return w, b

    k1, k2, k3, k4 = jax.random.split(key, 4)
    w1, b1 = linear(k1, 64, 128)
    w2, b2 = linear(k2, 128, 64)
    wp, bp = linear(k3, 64, 64)
    wv, bv = linear(k4, 64, 1)
    return dict(w1=w1, b1=b1, w2=w2, b2=b2, wp=wp, bp=bp, wv=wv, bv=bv)


def reference_forward(x, p):
    h1 = jax.nn.relu(x @ p["w1"] + p["b1"])
    h2 = jax.nn.relu(h1 @ p["w2"] + p["b2"])
    policy = h2 @ p["wp"] + p["bp"]
    value = jnp.tanh(h2 @ p["wv"] + p["bv"])
    return policy, value


if __name__ == "__main__":
    key = jax.random.PRNGKey(0)
    kx, kp = jax.random.split(key)

    B = 10  # small batch of flattened 8x8 boards (non-multiple of 8 -> exercises padding)
    x = jax.random.normal(kx, (B, 64), jnp.float32)
    params = init_params(kp)

    ref_policy, ref_value = reference_forward(x, params)

    # Exercise both the single-big-tile path and a multi-step grid path.
    for tb in (512, 8):
        policy, value = chessnet_forward(x, params, tile_b=tb)
        jax.block_until_ready((policy, value))
        assert policy.shape == (B, 64) and value.shape == (B, 1)
        assert jnp.allclose(policy, ref_policy, atol=1e-5, rtol=1e-5)
        assert jnp.allclose(value, ref_value, atol=1e-5, rtol=1e-5)

    print("KERNEL_OK")
</pallas_src>

<mosaic_0001>
module attributes {stable_mosaic.version = 11 : i64} {
  func.func @chessnet_kernel(%arg0: i32, %arg1: memref<16x64xf32, #tpu.memory_space<vmem>>, %arg2: memref<320x128xf32, #tpu.memory_space<vmem>>, %arg3: memref<8x128xf32, #tpu.memory_space<vmem>>, %arg4: memref<16x128xf32, #tpu.memory_space<vmem>>) attributes {dimension_semantics = [#tpu.dimension_semantics<parallel>], iteration_bounds = array<i64: 1>, scalar_prefetch = 0 : i64, scratch_operands = 0 : i64, tpu.core_type = #tpu.core_type<tc>, window_params = [{transform_indices = @transform_0, window_bounds = array<i64: 16, 64>}, {pipeline_mode = #tpu.pipeline_mode<synchronous>, transform_indices = @transform_1, window_bounds = array<i64: 320, 128>}, {pipeline_mode = #tpu.pipeline_mode<synchronous>, transform_indices = @transform_2, window_bounds = array<i64: 8, 128>}, {transform_indices = @transform_3, window_bounds = array<i64: 16, 128>}]} {
    %c0 = arith.constant 0 : index
    %c0_0 = arith.constant 0 : index
    %0 = vector.load %arg1[%c0, %c0_0] : memref<16x64xf32, #tpu.memory_space<vmem>>, vector<16x64xf32>
    %c0_1 = arith.constant 0 : index
    %c0_2 = arith.constant 0 : index
    %1 = vector.load %arg2[%c0_1, %c0_2] : memref<320x128xf32, #tpu.memory_space<vmem>>, vector<64x128xf32>
    %c64 = arith.constant 64 : index
    %c0_3 = arith.constant 0 : index
    %2 = vector.load %arg2[%c64, %c0_3] : memref<320x128xf32, #tpu.memory_space<vmem>>, vector<128x128xf32>
    %c192 = arith.constant 192 : index
    %c0_4 = arith.constant 0 : index
    %3 = vector.load %arg2[%c192, %c0_4] : memref<320x128xf32, #tpu.memory_space<vmem>>, vector<128x128xf32>
    %c0_5 = arith.constant 0 : index
    %c0_6 = arith.constant 0 : index
    %4 = vector.load %arg3[%c0_5, %c0_6] : memref<8x128xf32, #tpu.memory_space<vmem>>, vector<1x128xf32>
    %c1 = arith.constant 1 : index
    %c0_7 = arith.constant 0 : index
    %5 = vector.load %arg3[%c1, %c0_7] : memref<8x128xf32, #tpu.memory_space<vmem>>, vector<1x128xf32>
    %c2 = arith.constant 2 : index
    %c0_8 = arith.constant 0 : index
    %6 = vector.load %arg3[%c2, %c0_8] : memref<8x128xf32, #tpu.memory_space<vmem>>, vector<1x128xf32>
    %cst = arith.constant dense<0.000000e+00> : vector<16x128xf32>
    %7 = tpu.matmul %0, %1, %cst {dimension_numbers = #tpu.dot_dimension_numbers<[1], [0], [0], [1], [0, 0, 1, 1], [], []>} : vector<16x64xf32>, vector<64x128xf32>, vector<16x128xf32> -> vector<16x128xf32>
    %8 = vector.broadcast %4 : vector<1x128xf32> to vector<16x128xf32>
    %9 = arith.addf %7, %8 : vector<16x128xf32>
    %cst_9 = arith.constant 0.000000e+00 : f32
    %10 = vector.broadcast %cst_9 : f32 to vector<16x128xf32>
    %11 = arith.maximumf %9, %10 : vector<16x128xf32>
    %cst_10 = arith.constant dense<0.000000e+00> : vector<16x128xf32>
    %12 = tpu.matmul %11, %2, %cst_10 {dimension_numbers = #tpu.dot_dimension_numbers<[1], [0], [0], [1], [0, 0, 1, 1], [], []>} : vector<16x128xf32>, vector<128x128xf32>, vector<16x128xf32> -> vector<16x128xf32>
    %13 = vector.broadcast %5 : vector<1x128xf32> to vector<16x128xf32>
    %14 = arith.addf %12, %13 : vector<16x128xf32>
    %cst_11 = arith.constant 0.000000e+00 : f32
    %15 = vector.broadcast %cst_11 : f32 to vector<16x128xf32>
    %16 = arith.maximumf %14, %15 : vector<16x128xf32>
    %cst_12 = arith.constant dense<0.000000e+00> : vector<16x128xf32>
    %17 = tpu.matmul %16, %3, %cst_12 {dimension_numbers = #tpu.dot_dimension_numbers<[1], [0], [0], [1], [0, 0, 1, 1], [], []>} : vector<16x128xf32>, vector<128x128xf32>, vector<16x128xf32> -> vector<16x128xf32>
    %18 = vector.broadcast %6 : vector<1x128xf32> to vector<16x128xf32>
    %19 = arith.addf %17, %18 : vector<16x128xf32>
    %20 = tpu.iota {dimensions = array<i32: 1>} : vector<16x128xi32>
    %c64_i32 = arith.constant 64 : i32
    %21 = vector.broadcast %c64_i32 : i32 to vector<16x128xi32>
    %22 = arith.cmpi eq, %20, %21 : vector<16x128xi32>
    %23 = math.tanh %19 : vector<16x128xf32>
    %24 = arith.select %22, %23, %19 : vector<16x128xi1>, vector<16x128xf32>
    %c0_13 = arith.constant 0 : index
    %c0_14 = arith.constant 0 : index
    %25 = vector.load %arg4[%c0_13, %c0_14] : memref<16x128xf32, #tpu.memory_space<vmem>>, vector<16x128xf32>
    tpu.vector_store %arg4[%c0_13, %c0_14], %24 {strides = array<i32>} : memref<16x128xf32, #tpu.memory_space<vmem>>, vector<16x128xf32>,
    return
  }
  func.func @transform_0(%arg0: i32) -> (i32, i32) {
    %c0_i32 = arith.constant 0 : i32
    %c0_i32_0 = arith.constant 0 : i32
    return %arg0, %c0_i32 : i32, i32
  }
  func.func @transform_1(%arg0: i32) -> (i32, i32) {
    %c0_i32 = arith.constant 0 : i32
    %c0_i32_0 = arith.constant 0 : i32
    %c0_i32_1 = arith.constant 0 : i32
    return %c0_i32, %c0_i32_0 : i32, i32
  }
  func.func @transform_2(%arg0: i32) -> (i32, i32) {
    %c0_i32 = arith.constant 0 : i32
    %c0_i32_0 = arith.constant 0 : i32
    %c0_i32_1 = arith.constant 0 : i32
    return %c0_i32, %c0_i32_0 : i32, i32
  }
  func.func @transform_3(%arg0: i32) -> (i32, i32) {
    %c0_i32 = arith.constant 0 : i32
    %c0_i32_0 = arith.constant 0 : i32
    return %arg0, %c0_i32 : i32, i32
  }
}

</mosaic_0001>

<bundles_post_ra>
// kernel: tpu_custom_call.1
= control target key start
LH: loop header
LB: loop body
LE: loop exit
PB: predicated region body
PF: predicated region fallthrough
CT: control target
= control target key end

     0   :  { %8 = vsyncpa [#allocation3], 0  ;;  %s790_s0 = inlined_call_operand.hbm [shape: f32[16,64], index: 0, kind: input, shape index: {}]   ;;  %s791_s1 = inlined_call_operand.hbm [shape: f32[320,128], index: 1, kind: input, shape index: {}]   ;;  %s792_s2 = inlined_call_operand.hbm [shape: f32[8,128], index: 2, kind: input, shape index: {}]   ;;  %s793_s3 = inlined_call_operand.hbm [shape: f32[16,128], index: 3, kind: output, shape index: {}]  }
   0x1   :  { %9 = vsyncpa [#allocation6], 0 }
   0x2   :  { %10 = vsyncpa [#allocation4], 0  ;;  %s698_s12 = smov [#allocation5]   ;;  %s699_s14 = smov [#allocation2]  }
   0x3   :  { %s28_s13 = sshll.u32 %s698_s12, 4  ;;  %s16_s15 = sshll.u32 %s699_s14, 4  ;;  %s29_s13 = int_to_ptr.vmem [resolvable:$true] %s28_s13  ;;  %s724_s15 = int_to_ptr.vmem [resolvable:$true] %s16_s15 }
   0x4   :  { %s604_s18 = scalar_lea.hbm %s791_s1, 5120 }
   0x5   :  { %p605_p0 = scmp.ne.s32.totalorder %s791_s1, %s604_s18  ;;  %p608_p1 = scmp.lt.u32.totalorder %s604_s18, %s791_s1 }
   0x7   :  { %p610_p2 = pnand %p608_p1, %p605_p0 }
   0x9   :  { %613 = shalt.err (!%p610_p2)
}
   0xa   :  { %s614_s23 = scalar_lea.vmem %s29_s13, 5120  ;;  %p619_p4 = scmp.lt.s32.totalorder %s29_s13, %s29_s13 }
   0xb   :  { %p615_p3 = scmp.ne.s32.totalorder %s29_s13, %s614_s23  ;;  %p620_p5 = scmp.lt.s32.totalorder %s614_s23, %s614_s23 }
   0xd   :  { %p621_p6 = por %p620_p5, %p619_p4 }
   0xf   :  { %p622_p7 = pnand %p621_p6, %p615_p3 }
  0x11   :  { %625 = shalt.err (!%p622_p7)
}
  0x12   :  { %s700_s24 = smov 128   ;;  %s701_s25 = smov 8  }
  0x13   :  { %34 = dma.hbm_to_vmem [thread:$0]  %s791_s1, 5120, %s29_s13, [#allocation6], %s700_s24, %s700_s24, %s701_s25  }
  0x14   :  { %s626_s30 = scalar_lea.hbm %s790_s0, 256 }
  0x15   :  { %p627_p8 = scmp.ne.s32.totalorder %s790_s0, %s626_s30  ;;  %p630_p9 = scmp.lt.u32.totalorder %s626_s30, %s790_s0 }
  0x17   :  { %p632_p10 = pnand %p630_p9, %p627_p8 }
  0x19   :  { %635 = shalt.err (!%p632_p10)
}
  0x1a   :  { %s636_s8 = scalar_lea.vmem %s724_s15, 256  ;;  %p641_p12 = scmp.lt.s32.totalorder %s724_s15, %s724_s15 }
  0x1b   :  { %p637_p11 = scmp.ne.s32.totalorder %s724_s15, %s636_s8  ;;  %p642_p13 = scmp.lt.s32.totalorder %s636_s8, %s636_s8 }
  0x1d   :  { %p643_p0 = por %p642_p13, %p641_p12 }
  0x1f   :  { %p644_p1 = pnand %p643_p0, %p637_p11 }
  0x21   :  { %647 = shalt.err (!%p644_p1)
}
  0x22   :  { %22 = dma.hbm_to_vmem [thread:$0]  %s790_s0, 256, %s724_s15, [#allocation3], %s700_s24, %s700_s24, %s701_s25  }
  0x23   :  { %s702_s10 = smov [#allocation7]   ;;  %s648_s14 = scalar_lea.hbm %s792_s2, 128 }
  0x24   :  { %s41_s11 = sshll.u32 %s702_s10, 4  ;;  %p649_p2 = scmp.ne.s32.totalorder %s792_s2, %s648_s14  ;;  %s42_s11 = int_to_ptr.vmem [resolvable:$true] %s41_s11 }
  0x25   :  { %p652_p3 = scmp.lt.u32.totalorder %s648_s14, %s792_s2 }
  0x27   :  { %p654_p4 = pnand %p652_p3, %p649_p2 }
  0x29   :  { %657 = shalt.err (!%p654_p4)
}
  0x2a   :  { %s658_s20 = scalar_lea.vmem %s42_s11, 128  ;;  %p663_p6 = scmp.lt.s32.totalorder %s42_s11, %s42_s11 }
  0x2b   :  { %p659_p5 = scmp.ne.s32.totalorder %s42_s11, %s658_s20  ;;  %p664_p7 = scmp.lt.s32.totalorder %s658_s20, %s658_s20 }
  0x2d   :  { %p665_p8 = por %p664_p7, %p663_p6 }
  0x2f   :  { %p666_p9 = pnand %p665_p8, %p659_p5 }
  0x31   :  { %669 = shalt.err (!%p666_p9)
}
  0x32   :  { %44 = dma.hbm_to_vmem [thread:$0]  %s792_s2, 128, %s42_s11, [#allocation6]  }
  0x33   :  { %692 = dma.done.wait [#allocation3], 256  }
  0x34   :  { %693 = vsyncadd [#allocation3], 4294967040 }
  0x35   :  { %694 = dma.done.wait [#allocation6], 5248  }
  0x36   :  { %695 = vsyncadd [#allocation6], 4294962048  ;;  %v56_v0 = vld [vmem:[#allocation5] sm:$0xff]  ;;  %v57_v1 = vld [vmem:[#allocation5 + $0x8] sm:$0xff]  ;;  %vm103_vm0 = vcmask 523264   ;;  %s703_s2 = smov [#allocation8]  }
  0x37   :  { %v58_v2 = vld [vmem:[#allocation5 + $0x10] sm:$0xff]  ;;  %v514_v3 = vpack.c.bf16 %v57_v1, %v56_v0  ;;  %v59_v4 = vld [vmem:[#allocation5 + $0x18] sm:$0xff]  ;;  %v60_v6 = vld [vmem:[#allocation5 + $0x20] sm:$0xff]  ;;  %s361_s21 = sshll.u32 %s703_s2, 4  ;;  %s362_s21 = int_to_ptr.vmem [resolvable:$true] %s361_s21 }
  0x38   :  { %v518_v5 = vpack.c.bf16 %v59_v4, %v58_v2  ;;  %v61_v7 = vld [vmem:[#allocation5 + $0x28] sm:$0xff]  ;;  %v54_v8 = vld [vmem:[#allocation2] sm:$0xff]  ;;  %v64_v9 = vld [vmem:[#allocation5 + $0x40] sm:$0xff]  ;;  %s670_s22 = scalar_lea.vmem %s362_s21, 256  ;;  %p675_p11 = scmp.lt.s32.totalorder %s362_s21, %s362_s21 }
  0x39   :  { %515 = vmatprep.subr.bf16.mxu0 %v514_v3  ;;  %441 = vmatprep.mubr.msk.f32.mxu0 %vm103_vm0, %v54_v8  ;;  %v65_v10 = vld [vmem:[#allocation5 + $0x48] sm:$0xff]  ;;  %v66_v12 = vld [vmem:[#allocation5 + $0x50] sm:$0xff]  ;;  %v67_v13 = vld [vmem:[#allocation5 + $0x58] sm:$0xff]  ;;  %v522_v14 = vpack.c.bf16 %v61_v7, %v60_v6  ;;  %p671_p10 = scmp.ne.s32.totalorder %s362_s21, %s670_s22  ;;  %p676_p12 = scmp.lt.s32.totalorder %s670_s22, %s670_s22 }
  0x3a   :  { %517 = vmatpush3.bf16.msra.mxu0 %v514_v3  ;;  %v530_v11 = vpack.c.bf16 %v65_v10, %v64_v9  ;;  %v534_v15 = vpack.c.bf16 %v67_v13, %v66_v12  ;;  %v68_v16 = vld [vmem:[#allocation5 + $0x60] sm:$0xff]  ;;  %v69_v17 = vld [vmem:[#allocation5 + $0x68] sm:$0xff]  ;;  %v62_v18 = vld [vmem:[#allocation5 + $0x30] sm:$0xff] }
  0x3b   :  { %519 = vmatprep.subr.bf16.mxu0 %v518_v5  ;;  %v63_v19 = vld [vmem:[#allocation5 + $0x38] sm:$0xff]  ;;  %v538_v20 = vpack.c.bf16 %v69_v17, %v68_v16  ;;  %v70_v22 = vld [vmem:[#allocation5 + $0x70] sm:$0xff]  ;;  %v72_v25 = vld [vmem:[#allocation5 + $0x80] sm:$0xff]  ;;  %v347_v17 = vlaneseq  ;;  %p677_p13 = por %p676_p12, %p675_p11 }
  0x3c   :  { %531 = vmatprep.subr.bf16.mxu1 %v530_v11  ;;  %v526_v21 = vpack.c.bf16 %v63_v19, %v62_v18  ;;  %v71_v23 = vld [vmem:[#allocation5 + $0x78] sm:$0xff]  ;;  %v73_v26 = vld [vmem:[#allocation5 + $0x88] sm:$0xff]  ;;  %v74_v29 = vld [vmem:[#allocation5 + $0x90] sm:$0xff] }
  0x3d   :  { %533 = vmatpush3.bf16.msra.mxu1 %v530_v11  ;;  %v542_v24 = vpack.c.bf16 %v71_v23, %v70_v22  ;;  %v55_v27 = vld [vmem:[#allocation2 + $0x8] sm:$0xff]  ;;  %v546_v28 = vpack.c.bf16 %v73_v26, %v72_v25  ;;  %v76_v32 = vld [vmem:[#allocation5 + $0xa0] sm:$0xff]  ;;  %v77_v33 = vld [vmem:[#allocation5 + $0xa8] sm:$0xff]  ;;  %v348_v18 = vand.u32 127, %v347_v17  ;;  %p678_p0 = pnand %p677_p13, %p671_p10 }
  0x3e   :  { %521 = vmatpush3.bf16.msra.mxu0 %v518_v5  ;;  %535 = vmatprep.subr.bf16.mxu1 %v534_v15  ;;  %v75_v30 = vld [vmem:[#allocation5 + $0x98] sm:$0xff]  ;;  %v554_v34 = vpack.c.bf16 %v77_v33, %v76_v32  ;;  %v78_v35 = vld [vmem:[#allocation5 + $0xb0] sm:$0xff]  ;;  %v80_v38 = vld [vmem:[#allocation5 + $0xc0] sm:$0xff] }
  0x3f   :  { %523 = vmatprep.subr.bf16.mxu0 %v522_v14  ;;  %v550_v31 = vpack.c.bf16 %v75_v30, %v74_v29  ;;  %v79_v36 = vld [vmem:[#allocation5 + $0xb8] sm:$0xff]  ;;  %v81_v39 = vld [vmem:[#allocation5 + $0xc8] sm:$0xff]  ;;  %v82_v40 = vld [vmem:[#allocation5 + $0xd0] sm:$0xff]  ;;  %vm349_vm1 = vcmp.eq.s32.totalorder %v348_v18, 64 }
  0x40   :  { %v558_v37 = vpack.c.bf16 %v79_v36, %v78_v35  ;;  %v562_v41 = vpack.c.bf16 %v81_v39, %v80_v38  ;;  %v83_v42 = vld [vmem:[#allocation5 + $0xd8] sm:$0xff]  ;;  %v84_v44 = vld [vmem:[#allocation5 + $0xe0] sm:$0xff]  ;;  %v85_v45 = vld [vmem:[#allocation5 + $0xe8] sm:$0xff] }
  0x41   :  { %537 = vmatpush3.bf16.msra.mxu1 %v534_v15  ;;  %v566_v43 = vpack.c.bf16 %v83_v42, %v82_v40  ;;  %v570_v46 = vpack.c.bf16 %v85_v45, %v84_v44  ;;  %v86_v47 = vld [vmem:[#allocation5 + $0xf0] sm:$0xff]  ;;  %v87_v48 = vld [vmem:[#allocation5 + $0xf8] sm:$0xff]  ;;  %v88_v50 = vld [vmem:[#allocation5 + $0x100] sm:$0xff] }
  0x42   :  { %525 = vmatpush3.bf16.msra.mxu0 %v522_v14  ;;  %539 = vmatprep.subr.bf16.mxu1 %v538_v20  ;;  %v574_v49 = vpack.c.bf16 %v87_v48, %v86_v47  ;;  %v89_v51 = vld [vmem:[#allocation5 + $0x108] sm:$0xff]  ;;  %v90_v53 = vld [vmem:[#allocation5 + $0x110] sm:$0xff]  ;;  %v91_v54 = vld [vmem:[#allocation5 + $0x118] sm:$0xff] }
  0x43   :  { %527 = vmatprep.subr.bf16.mxu0 %v526_v21  ;;  %v578_v52 = vpack.c.bf16 %v89_v51, %v88_v50  ;;  %v582_v55 = vpack.c.bf16 %v91_v54, %v90_v53  ;;  %v92_v56 = vld [vmem:[#allocation5 + $0x120] sm:$0xff]  ;;  %v93_v57 = vld [vmem:[#allocation5 + $0x128] sm:$0xff]  ;;  %v94_v2 = vld [vmem:[#allocation5 + $0x130] sm:$0xff] }
  0x44   :  { %v586_v58 = vpack.c.bf16 %v93_v57, %v92_v56  ;;  %v374_v59 = vld [vmem:[#allocation7] ss:$0 sm:$0xff]  ;;  %v95_v3 = vld [vmem:[#allocation5 + $0x138] sm:$0xff]  ;;  %v377_v5 = vld [vmem:[#allocation7 + $0x1] ss:$0 sm:$0xff] }
  0x45   :  { %541 = vmatpush3.bf16.msra.mxu1 %v538_v20  ;;  %v590_v4 = vpack.c.bf16 %v95_v3, %v94_v2  ;;  %v378_v12 = vld [vmem:[#allocation7 + $0x2] ss:$0 sm:$0xff] }
  0x46   :  { %529 = vmatpush3.bf16.msra.mxu0 %v526_v21  ;;  %543 = vmatprep.subr.bf16.mxu1 %v542_v24 }
  0x47   :  { %563 = vmatprep.subr.bf16.mxu0 %v562_v41 }
  0x49   :  { %442 = vmatmul.mubr.msk.f32.vlgmr.msra.gmra.mrb[0].mxu0 %vm103_vm0, %v55_v27  ;;  %545 = vmatpush3.bf16.msra.mxu1 %v542_v24 }
  0x4a   :  { %547 = vmatprep.subr.bf16.mxu1 %v546_v28  ;;  %565 = vmatpush3.bf16.msra.mxu0 %v562_v41 }
  0x4b   :  { %567 = vmatprep.subr.bf16.mxu0 %v566_v43 }
  0x4d   :  { %549 = vmatpush3.bf16.msra.mxu1 %v546_v28 }
  0x4e   :  { %551 = vmatprep.subr.bf16.mxu1 %v550_v31  ;;  %569 = vmatpush3.bf16.msra.mxu0 %v566_v43 }
  0x4f   :  { %571 = vmatprep.subr.bf16.mxu0 %v570_v46 }
  0x51   :  { %553 = vmatpush3.bf16.msra.mxu1 %v550_v31 }
  0x52   :  { %555 = vmatprep.subr.bf16.mxu1 %v554_v34  ;;  %573 = vmatpush3.bf16.msra.mxu0 %v570_v46 }
  0x53   :  { %575 = vmatprep.subr.bf16.mxu0 %v574_v49 }
  0x55   :  { %557 = vmatpush3.bf16.msra.mxu1 %v554_v34 }
  0x56   :  { %559 = vmatprep.subr.bf16.mxu1 %v558_v37  ;;  %577 = vmatpush3.bf16.msra.mxu0 %v574_v49 }
  0x57   :  { %579 = vmatprep.subr.bf16.mxu0 %v578_v52 }
  0x59   :  { %561 = vmatpush3.bf16.msra.mxu1 %v558_v37 }
  0x5a   :  { %581 = vmatpush3.bf16.msra.mxu0 %v578_v52 }
  0x5b   :  { %583 = vmatprep.subr.bf16.mxu0 %v582_v55 }
  0x5e   :  { %585 = vmatpush3.bf16.msra.mxu0 %v582_v55 }
  0x5f   :  { %587 = vmatprep.subr.bf16.mxu0 %v586_v58 }
  0x62   :  { %589 = vmatpush3.bf16.msra.mxu0 %v586_v58 }
  0x63   :  { %591 = vmatprep.subr.bf16.mxu0 %v590_v4 }
  0x66   :  { %593 = vmatpush3.bf16.msra.mxu0 %v590_v4 }
 0x11c   :  { %v443_v60 = vpop.f32.mrb[0].mxu0 }
 0x11d   :  { %v182_v61 = vadd.f32 %v443_v60, %v374_v59  ;;  %v176_v62 = vpop.f32.mrb[1].mxu0 }
 0x11e   :  { %v177_v63 = vadd.f32 %v374_v59, %v176_v62 }
 0x11f   :  { %v186_v1 = vmax.f32 %v182_v61, 0.0 }
 0x120   :  { %v185_v0 = vmax.f32 %v177_v63, 0.0 }
 0x122   :  { %476 = vmatprep.mubr.f32.mxu1 %v185_v0 }
 0x123   :  { %477 = vmatmul.mubr.f32.vlgmr.msra.gmra.mrb[0].mxu1 %v186_v1 }
 0x1f6   :  { %v478_v6 = vpop.f32.mrb[0].mxu1 }
 0x1f7   :  { %v263_v7 = vadd.f32 %v478_v6, %v377_v5  ;;  %v257_v8 = vpop.f32.mrb[1].mxu1 }
 0x1f8   :  { %v258_v9 = vadd.f32 %v377_v5, %v257_v8 }
 0x1f9   :  { %v267_v11 = vmax.f32 %v263_v7, 0.0 }
 0x1fa   :  { %v266_v10 = vmax.f32 %v258_v9, 0.0 }
 0x1fc   :  { %511 = vmatprep.mubr.f32.mxu0 %v266_v10 }
 0x1fd   :  { %512 = vmatmul.mubr.f32.vlgmr.msra.gmra.mrb[2].mxu0 %v267_v11 }
 0x2d0   :  { %v513_v13 = vpop.f32.mrb[2].mxu0 }
 0x2d1   :  { %v344_v14 = vadd.f32 %v513_v13, %v378_v12  ;;  %v338_v15 = vpop.f32.mrb[3].mxu0 }
 0x2d2   :  { %v339_v16 = vadd.f32 %v378_v12, %v338_v15 }
 0x2d3   :  { %600 = vtanh.f32 %v344_v14 }
 0x2d4   :  { %602 = vtanh.f32 %v339_v16 }
 0x2dd   :  { %v601_v19 = vpop.eup %600 }
 0x2de   :  { %v603_v20 = vpop.eup %602  ;;  %v353_v21 = vsel %vm349_vm1, %v601_v19, %v344_v14 }
 0x2df   :  { %v352_v22 = vsel %vm349_vm1, %v603_v20, %v339_v16  ;;  %355 = vst [vmem:[#allocation8 + $0x8] sm:$0xff] %v353_v21 }
 0x2e0   :  { %354 = vst [vmem:[#allocation8] sm:$0xff] %v352_v22 }
 0x2e1   :  { %681 = shalt.err (!%p678_p0)
}
 0x2e2   :  { %s682_s27 = scalar_lea.hbm %s793_s3, 256 }
 0x2e3   :  { %p683_p1 = scmp.ne.s32.totalorder %s793_s3, %s682_s27  ;;  %p686_p2 = scmp.lt.u32.totalorder %s682_s27, %s793_s3 }
 0x2e5   :  { %p688_p3 = pnand %p686_p2, %p683_p1 }
 0x2e7   :  { %691 = shalt.err (!%p688_p3)
}
 0x2e8   :  { %367 = dma.vmem_to_hbm [thread:$0]  %s362_s21, 256, %s793_s3, [#allocation4], %s700_s24, %s700_s24, %s701_s25  }
 0x2e9   :  { %696 = dma.done.wait [#allocation4], 256  }
 0x2ea   :  { %697 = vsyncadd [#allocation4], 4294967040 }
 0x2eb   :  { %371 = vsyncpa [#allocation3], 1 }
 0x2ec   :  { %372 = vsyncpa [#allocation6], 1 }
 0x2ed   :  { %373 = vsyncpa [#allocation4], 1 }

</bundles_post_ra>
